<compile_context>
chip_gen: v6e
topology: v6e:2x2x1
jax: 0.10.0
libtpu: 0.0.40
codegen_flags: <defaults>
</compile_context>

<pallas_src>
import functools

import jax
import jax.numpy as jnp
from jax.experimental import pallas as pl
from jax.experimental.pallas import tpu as pltpu


def _round_up(x, m):
    return (x + m - 1) // m * m


def _pick_tm(m):
    """Rows per M tile.

    - At least one full MXU tile (256 rows) even for tiny batches (padded rows
      are free: the MXU cadence is the same and they are sliced off).
    - Multiples of 256 (matches the 2x256x256 MXU on v6e/v7x).
    - Up to 1024 rows for large M: weights are re-streamed once per M tile, so
      arithmetic intensity on the weight DMA ~ tm (v6e needs large tm to be
      compute-bound on the weight stream).
    - Keep >= 2 M tiles whenever M allows so the "parallel" axis can be split
      across both v7x TensorCores.
    """
    if m <= 256:
        return 256
    tm = min(1024, _round_up(m, 256))
    if _round_up(m, tm) // tm < 2:
        half = _round_up((m + 1) // 2, 256)
        tm = max(256, min(tm, half))
    return tm


def _fused_mlp_kernel(x_hbm, w_ref, b_ref, o_ref, act_ref, copy_sem, *,
                      tm, k_pad, n_pad, out_pad):
    # x_hbm   : (M_pad, act_w) f32, memory_space=ANY (manual DMA at layer 0)
    # w_ref   : (1, K_pad, N_pad) bf16, layer-l weight in (D_in, D_out) layout
    # b_ref   : (1, 1, N_pad) f32, layer-l bias row
    # o_ref   : (tm, out_pad)      output tile (written only at the last layer)
    # act_ref : (tm, act_w) f32    VMEM-resident activation across the layer axis
    m = pl.program_id(0)
    l = pl.program_id(1)
    last = pl.num_programs(1) - 1

    # Layer 0: pull this M tile of the padded input straight from HBM into the
    # resident activation scratch (no double-buffered pipeline slot for x).
    @pl.when(l == 0)
    def _load_input():
        row0 = pl.multiple_of(m * tm, tm)
        cp = pltpu.make_async_copy(x_hbm.at[pl.ds(row0, tm), :], act_ref, copy_sem)
        cp.start()
        cp.wait()

    # bf16 x bf16 -> f32 accumulation on the MXU.
    a = act_ref[:, :k_pad].astype(jnp.bfloat16)
    y = jnp.dot(a, w_ref[0], preferred_element_type=jnp.float32) + b_ref[0]

    @pl.when(l != last)
    def _hidden_layer():
        act_ref[:, :n_pad] = jnp.maximum(y, 0.0)

    @pl.when(l == last)
    def _last_layer():
        o_ref[...] = y[:, :out_pad].astype(o_ref.dtype)


def fused_mlp(x_pad, w_stack, b_stack, *, tm, out_pad, out_dtype):
    """x_pad: (M_pad, act_w) f32, w_stack: (L, K_pad, N_pad) bf16,
    b_stack: (L, 1, N_pad) f32."""
    m_pad, act_w = x_pad.shape
    num_layers, k_pad, n_pad = w_stack.shape
    n_m_tiles = m_pad // tm
    out_bytes = jnp.dtype(out_dtype).itemsize

    kernel = functools.partial(_fused_mlp_kernel, tm=tm, k_pad=k_pad,
                               n_pad=n_pad, out_pad=out_pad)

    # Scheduler hint for the fused custom call.
    flops = 2 * m_pad * num_layers * k_pad * n_pad
    bytes_accessed = (m_pad * act_w * 4                                  # x read
                      + n_m_tiles * num_layers * (k_pad * n_pad * 2      # weights
                                                  + n_pad * 4)           # biases
                      + m_pad * out_pad * out_bytes)                     # output

    # VMEM actually used: double-buffered bf16 weights + bias, double-buffered
    # output tile, resident f32 activation scratch.  Cap at v7x physical 64 MiB.
    vmem_est = (2 * k_pad * n_pad * 2
                + 2 * n_pad * 4
                + 2 * tm * out_pad * out_bytes
                + tm * act_w * 4)
    vmem_limit = int(min(64 << 20, max(32 << 20, vmem_est * 5 // 4 + (2 << 20))))

    return pl.pallas_call(
        kernel,
        out_shape=jax.ShapeDtypeStruct((m_pad, out_pad), out_dtype),
        grid_spec=pltpu.PrefetchScalarGridSpec(
            num_scalar_prefetch=0,
            grid=(n_m_tiles, num_layers),
            in_specs=[
                pl.BlockSpec(memory_space=pl.ANY),                         # x (manual DMA)
                pl.BlockSpec((1, k_pad, n_pad), lambda m, l: (l, 0, 0)),   # weights (bf16)
                pl.BlockSpec((1, 1, n_pad), lambda m, l: (l, 0, 0)),       # biases (f32)
            ],
            out_specs=pl.BlockSpec((tm, out_pad), lambda m, l: (m, 0)),
            scratch_shapes=[pltpu.VMEM((tm, act_w), jnp.float32),
                            pltpu.SemaphoreType.DMA(())],
        ),
        compiler_params=pltpu.CompilerParams(
            dimension_semantics=("parallel", "arbitrary"),
            vmem_limit_bytes=vmem_limit),
        cost_estimate=pl.CostEstimate(flops=flops, transcendentals=0,
                                      bytes_accessed=bytes_accessed),
    )(x_pad, w_stack, b_stack)


class MLPPallas:
    """Mirror of the PyTorch MLP module; the whole forward runs in one Pallas kernel."""

    def __init__(self, input_dim, hidden_dim, output_dim, num_layers, key):
        self.num_layers = num_layers
        self.input_dim = input_dim
        self.output_dim = output_dim
        h = [hidden_dim] * (num_layers - 1)
        dims_in = [input_dim] + h
        dims_out = h + [output_dim]

        # PyTorch-style f32 parameters (kept for the reference check).
        self.params = []
        for n, k in zip(dims_in, dims_out):
            key, kw, kb = jax.random.split(key, 3)
            # PyTorch nn.Linear default init: U(-1/sqrt(fan_in), 1/sqrt(fan_in))
            bound = 1.0 / (n ** 0.5)
            w = jax.random.uniform(kw, (k, n), jnp.float32, -bound, bound)
            b = jax.random.uniform(kb, (k,), jnp.float32, -bound, bound)
            self.params.append((w, b))

        # Lane-dense rectangular padding: K covers every layer input width,
        # N covers every layer output width; the HBM output only carries
        # round_up(output_dim, 128) columns.
        self.k_pad = _round_up(max(dims_in), 128)
        self.n_pad = _round_up(max(dims_out), 128)
        self.out_pad = _round_up(output_dim, 128)
        self.act_w = max(self.k_pad, self.n_pad)

        # Pre-pack for the fused kernel: weights transposed to (D_in, D_out),
        # stored in bf16 (streamed at full MXU rate, half the HBM/VMEM bytes).
        w_stack = jnp.zeros((num_layers, self.k_pad, self.n_pad), jnp.bfloat16)
        b_stack = jnp.zeros((num_layers, 1, self.n_pad), jnp.float32)
        for i, (w, b) in enumerate(self.params):
            d_out, d_in = w.shape
            w_stack = w_stack.at[i, :d_in, :d_out].set(w.T.astype(jnp.bfloat16))
            b_stack = b_stack.at[i, 0, :d_out].set(b)
        self.w_stack = w_stack
        self.b_stack = b_stack
        # TODO(synk): for very large / highly unequal layer widths, tile the
        # weight K/N axes per layer (scalar-prefetched dims table) instead of a
        # single (k_pad, n_pad) slab, keeping bias+ReLU after the full K sum.

    def __call__(self, x):
        # x: (..., input_dim); Linear applies on the last dim (PyTorch semantics).
        lead = x.shape[:-1]
        x2d = x.reshape(-1, x.shape[-1])
        m = x2d.shape[0]
        tm = _pick_tm(m)
        m_pad = _round_up(m, tm)
        x_pad = jnp.zeros((m_pad, self.act_w), jnp.float32)
        x_pad = x_pad.at[:m, :self.input_dim].set(x2d.astype(jnp.float32))
        out = fused_mlp(x_pad, self.w_stack, self.b_stack, tm=tm,
                        out_pad=self.out_pad, out_dtype=x.dtype)
        return out[:m, :self.output_dim].reshape(*lead, self.output_dim)


def _reference_forward(params, num_layers, x, weight_dtype=jnp.float32):
    # Pure-JAX reference with the same semantics as the PyTorch module.
    # weight_dtype=bfloat16 simulates the kernel's bf16 MXU inputs exactly
    # (bf16 operands, f32 accumulation).
    lead = x.shape[:-1]
    x2d = x.reshape(-1, x.shape[-1]).astype(jnp.float32)
    for i, (w, b) in enumerate(params):
        a = x2d.astype(weight_dtype).astype(jnp.float32)
        wq = w.astype(weight_dtype).astype(jnp.float32)
        y = a @ wq.T + b
        x2d = jnp.maximum(y, 0.0) if i < num_layers - 1 else y
    return x2d.reshape(*lead, x2d.shape[-1])


if __name__ == "__main__":
    key = jax.random.PRNGKey(0)
    k_in, k_params = jax.random.split(key)

    batch, seq = 2, 8
    input_dim, hidden_dim, output_dim, num_layers = 16, 32, 8, 3

    x = jax.random.normal(k_in, (batch, seq, input_dim), jnp.float32)

    mlp = MLPPallas(input_dim, hidden_dim, output_dim, num_layers, k_params)

    out = jax.block_until_ready(mlp(x))
    assert out.shape == (batch, seq, output_dim), out.shape

    # Tight check against a reference that uses the same bf16-quantized
    # operands (differences are only f32 accumulation order).
    ref_bf16 = _reference_forward(mlp.params, num_layers, x, weight_dtype=jnp.bfloat16)
    assert jnp.allclose(out, ref_bf16, atol=1e-3, rtol=1e-3), "mismatch vs bf16 reference"

    # Loose sanity check against the exact f32 PyTorch-semantics reference.
    ref_f32 = _reference_forward(mlp.params, num_layers, x)
    assert jnp.allclose(out, ref_f32, atol=5e-2, rtol=5e-2), "mismatch vs f32 reference"

    print("KERNEL_OK")
</pallas_src>

<mosaic_0001>
module attributes {stable_mosaic.version = 11 : i64} {
  func.func @_fused_mlp_kernel(%arg0: i32, %arg1: i32, %arg2: memref<256x128xf32, #tpu.memory_space<any>>, %arg3: memref<1x128x128xbf16, #tpu.memory_space<vmem>>, %arg4: memref<1x1x128xf32, #tpu.memory_space<vmem>>, %arg5: memref<256x128xf32, #tpu.memory_space<vmem>>, %arg6: memref<256x128xf32, #tpu.memory_space<vmem>>, %arg7: memref<!tpu.dma_semaphore, #tpu.memory_space<semaphore_mem>>) attributes {dimension_semantics = [#tpu.dimension_semantics<parallel>, #tpu.dimension_semantics<arbitrary>], iteration_bounds = array<i64: 1, 3>, scalar_prefetch = 0 : i64, scratch_operands = 2 : i64, tpu.core_type = #tpu.core_type<tc>, window_params = [{}, {transform_indices = @transform_1, window_bounds = array<i64: 1, 128, 128>}, {transform_indices = @transform_2, window_bounds = array<i64: 1, 1, 128>}, {transform_indices = @transform_3, window_bounds = array<i64: 256, 128>}]} {
    %c0_i32 = arith.constant 0 : i32
    %0 = arith.cmpi eq, %arg1, %c0_i32 : i32
    %1 = arith.extui %0 : i1 to i32
    %c0_i32_0 = arith.constant 0 : i32
    %2 = arith.cmpi ne, %1, %c0_i32_0 : i32
    scf.if %2 {
      %c256_i32 = arith.constant 256 : i32
      %18 = arith.muli %arg0, %c256_i32 : i32
      %19 = tpu.assume_multiple %18, 256 : i32
      %c0_i32_11 = arith.constant 0 : i32
      %20 = tpu.memref_slice %arg2[%19, %c0_i32_11] : memref<256x128xf32, #tpu.memory_space<any>> -> memref<256x128xf32, #tpu.memory_space<any>>
      tpu.enqueue_dma source(%20 : memref<256x128xf32, #tpu.memory_space<any>>) target(%arg6 : memref<256x128xf32, #tpu.memory_space<vmem>>) target_semaphore(%arg7 : memref<!tpu.dma_semaphore, #tpu.memory_space<semaphore_mem>>)
      %c0_i32_12 = arith.constant 0 : i32
      %21 = tpu.memref_slice %arg2[%19, %c0_i32_12] : memref<256x128xf32, #tpu.memory_space<any>> -> memref<256x128xf32, #tpu.memory_space<any>>
      tpu.wait_dma2 semaphore(%arg7 : memref<!tpu.dma_semaphore, #tpu.memory_space<semaphore_mem>>) src(%21 : memref<256x128xf32, #tpu.memory_space<any>>) dst(%arg6 : memref<256x128xf32, #tpu.memory_space<vmem>>)
    } else {
    }
    %c0 = arith.constant 0 : index
    %c0_1 = arith.constant 0 : index
    %3 = vector.load %arg6[%c0, %c0_1] : memref<256x128xf32, #tpu.memory_space<vmem>>, vector<256x128xf32>
    %4 = arith.truncf %3 : vector<256x128xf32> to vector<256x128xbf16>
    %c0_2 = arith.constant 0 : index
    %c0_3 = arith.constant 0 : index
    %c0_4 = arith.constant 0 : index
    %5 = vector.load %arg3[%c0_2, %c0_3, %c0_4] : memref<1x128x128xbf16, #tpu.memory_space<vmem>>, vector<1x128x128xbf16>
    %6 = vector.shape_cast %5 : vector<1x128x128xbf16> to vector<128x128xbf16>
    %cst = arith.constant dense<0.000000e+00> : vector<256x128xf32>
    %7 = tpu.matmul %4, %6, %cst {dimension_numbers = #tpu.dot_dimension_numbers<[1], [0], [0], [1], [0, 0, 1, 1], [], []>} : vector<256x128xbf16>, vector<128x128xbf16>, vector<256x128xf32> -> vector<256x128xf32>
    %c0_5 = arith.constant 0 : index
    %c0_6 = arith.constant 0 : index
    %c0_7 = arith.constant 0 : index
    %8 = vector.load %arg4[%c0_5, %c0_6, %c0_7] : memref<1x1x128xf32, #tpu.memory_space<vmem>>, vector<1x1x128xf32>
    %9 = vector.shape_cast %8 : vector<1x1x128xf32> to vector<1x128xf32>
    %10 = vector.broadcast %9 : vector<1x128xf32> to vector<256x128xf32>
    %11 = arith.addf %7, %10 : vector<256x128xf32>
    %c2_i32 = arith.constant 2 : i32
    %12 = arith.cmpi ne, %arg1, %c2_i32 : i32
    %13 = arith.extui %12 : i1 to i32
    %c0_i32_8 = arith.constant 0 : i32
    %14 = arith.cmpi ne, %13, %c0_i32_8 : i32
    scf.if %14 {
      %cst_11 = arith.constant 0.000000e+00 : f32
      %18 = vector.broadcast %cst_11 : f32 to vector<256x128xf32>
      %19 = arith.maximumf %11, %18 : vector<256x128xf32>
      %c0_12 = arith.constant 0 : index
      %c0_13 = arith.constant 0 : index
      %20 = vector.load %arg6[%c0_12, %c0_13] : memref<256x128xf32, #tpu.memory_space<vmem>>, vector<256x128xf32>
      tpu.vector_store %arg6[%c0_12, %c0_13], %19 {strides = array<i32>} : memref<256x128xf32, #tpu.memory_space<vmem>>, vector<256x128xf32>,
    } else {
    }
    %c2_i32_9 = arith.constant 2 : i32
    %15 = arith.cmpi eq, %arg1, %c2_i32_9 : i32
    %16 = arith.extui %15 : i1 to i32
    %c0_i32_10 = arith.constant 0 : i32
    %17 = arith.cmpi ne, %16, %c0_i32_10 : i32
    scf.if %17 {
      %c0_11 = arith.constant 0 : index
      %c0_12 = arith.constant 0 : index
      %18 = vector.load %arg5[%c0_11, %c0_12] : memref<256x128xf32, #tpu.memory_space<vmem>>, vector<256x128xf32>
      tpu.vector_store %arg5[%c0_11, %c0_12], %11 {strides = array<i32>} : memref<256x128xf32, #tpu.memory_space<vmem>>, vector<256x128xf32>,
    } else {
    }
    return
  }
  func.func @transform_1(%arg0: i32, %arg1: i32) -> (i32, i32, i32) {
    %c0_i32 = arith.constant 0 : i32
    %c0_i32_0 = arith.constant 0 : i32
    %c0_i32_1 = arith.constant 0 : i32
    return %arg1, %c0_i32, %c0_i32_0 : i32, i32, i32
  }
  func.func @transform_2(%arg0: i32, %arg1: i32) -> (i32, i32, i32) {
    %c0_i32 = arith.constant 0 : i32
    %c0_i32_0 = arith.constant 0 : i32
    %c0_i32_1 = arith.constant 0 : i32
    return %arg1, %c0_i32, %c0_i32_0 : i32, i32, i32
  }
  func.func @transform_3(%arg0: i32, %arg1: i32) -> (i32, i32) {
    %c0_i32 = arith.constant 0 : i32
    %c0_i32_0 = arith.constant 0 : i32
    return %arg0, %c0_i32 : i32, i32
  }
}

</mosaic_0001>

<bundles_post_ra>
// kernel: tpu_custom_call.1
= control target key start
LH: loop header
LB: loop body
LE: loop exit
PB: predicated region body
PF: predicated region fallthrough
CT: control target
= control target key end

     0   :  { %8 = vsyncpa [#allocation5], 0  ;;  %s1344_s0 = inlined_call_operand.hbm [shape: f32[256,128], index: 0, kind: input, shape index: {}]   ;;  %s1345_s1 = inlined_call_operand.hbm [shape: bf16[3,128,128], index: 1, kind: input, shape index: {}]   ;;  %s1346_s2 = inlined_call_operand.vmem [shape: f32[3,1,128], index: 2, kind: input, shape index: {}]   ;;  %s1347_s3 = inlined_call_operand.hbm [shape: f32[256,128], index: 3, kind: output, shape index: {}]  }
   0x1   :  { %10 = vsyncpa [#allocation5 + $0x1], 0 }
   0x2   :  { %11 = vsyncpa [#allocation6], 0  ;;  %s1035_s12 = smov 0   ;;  %s1037_s13 = smov 0  }
   0x3   :  { %s1039_s14 = smov 0   ;;  %s1041_s15 = smov 0  }
   0x4   :  { %s1043_s16 = smov 0   ;;  %s1045_s17 = smov 0  }
   0x5 LB: > { %s679_s18 = sadd.s32 4294967295, %s1006_s17   ;;  %s26_s19 = sadd.s32 1, %s1002_s16  ;;  %s1006_s17 = sphi %s1045_s17, %s17_s17   ;;  %s1002_s16 = sphi %s1043_s16, %s1356_s16   ;;  %s998_s15 = sphi %s1041_s15, %s1355_s15   ;;  %s994_s14 = sphi %s1039_s14, %s1354_s14   ;;  %s990_s13 = sphi %s1037_s13, %s1353_s13   ;;  %s986_s12 = sphi %s1035_s12, %s1352_s12  }
   0x6   : > { %p27_p0 = scmp.ge.s32.totalorder %s26_s19, 3  ;;  %s36_s20 = sadd.s32 1, %s994_s14 }
   0x7   : > { %p43_p1 = scmp.ne.s32.totalorder %s994_s14, %s990_s13  ;;  %p44_p2 = scmp.eq.s32.totalorder %s1006_s17, 0 }
   0x8   : > { %s1358_s19 = smov (%p27_p0, %s26_s19), 0  ;;  %p49_p4 = scmp.ne.s32.totalorder %s990_s13, %s986_s12 }
   0x9   : > { %p1071_p3 = por %p44_p2, %p43_p1  ;;  %s33_s22 = ssub.s32 %s1002_s16, %s1358_s19 }
   0xa   : > { %p50_p5 = scmp.eq.s32.totalorder %s679_s18, 0  ;;  %p34_p6 = scmp.eq.s32.totalorder %s33_s22, 0 }
   0xb   : > { %p806_p8 = scmp.lt.s32.totalorder %s1006_s17, 3  ;;  %s125_s25 = sand.u32 1, %s994_s14  }
   0xc   : > { %p1080_p7 = por %p50_p5, %p49_p4  ;;  %s704_s26 = sshll.u32 %s1002_s16, 10 }
   0xd   : > { %s1086_s24 = scalar_select %p34_p6, %s994_s14, %s36_s20  }
   0xe   : > { %s682_s27 = sshll.u32 %s125_s25, 6  ;;  %s135_s30 = scalar_lea.hbm %s1345_s1, %s704_s26 }
   0xf   : > { %s129_s4 = scalar_lea.vmem [#allocation4], %s682_s27  ;;  %p1095_p9 = pnand %p806_p8, %p1071_p3 }
  0x10   : > { %s136_s5 = sshll.u32 %s129_s4, 4  ;;  %s126_s7 = scalar_lea.sflag [#allocation5], %s125_s25  ;;  %s137_s5 = int_to_ptr.vmem [resolvable:$true] %s136_s5 }
  0x11   : > { %p874_p10 = pneg %p1095_p9  ;;  %s885_s8 = scalar_lea.vmem %s137_s5, 1024 }
  0x12   : > { %p886_p11 = scmp.ne.s32.totalorder %s137_s5, %s885_s8  ;;  %s1008_s9 = smov [#allocation4]  }
  0x13   : > { %s890_s10 = sshll.u32 %s1008_s9, 4  ;;  %s891_s10 = int_to_ptr.vmem [resolvable:$false] %s890_s10 }
  0x14   : > { %p888_p12 = pnand %p886_p11, %p874_p10  ;;  %s892_s11 = scalar_lea.vmem %s891_s10, 2048 }
  0x15   : > { %p893_p0 = scmp.lt.s32.totalorder %s137_s5, %s891_s10  ;;  %p894_p1 = scmp.lt.s32.totalorder %s892_s11, %s885_s8 }
  0x16   : > { %p889_p13 = pneg %p888_p12 }
  0x17   : > { %p895_p2 = por %p894_p1, %p893_p0 }
  0x19   : > { %p896_p3 = pnand %p895_p2, %p889_p13 }
  0x1b   : > { %899 = shalt.err (!%p896_p3)
}
  0x1c   : > { %s1009_s12 = smov 64   ;;  %s1010_s20 = smov 4  }
  0x1d   : > { %805 = dma.hbm_to_vmem [thread:$0]  (!%p1095_p9), %s135_s30, 1024, %s137_s5, %s126_s7, %s1009_s12, %s1009_s12, %s1010_s20  }
  0x1e   : > { %p685_p4 = scmp.ge.s32.totalorder %s1006_s17, 1  ;;  %p150_p5 = scmp.lt.s32.totalorder %s1006_s17, 4 }
  0x20   : > { %p151_p6 = pnand %p685_p4, %p150_p5 }
  0x21   : > { %s156_s21 = sand.u32 (!%p151_p6), 1, %s990_s13  }
  0x22   : > { %154 = sbr.rel (%p151_p6) target bundleno = 370 (0x172), region = 28  ;;  %s686_s22 = sshll.u32 (!%p151_p6), %s156_s21, 6 }
  0x23   : > { %s157_s25 = scalar_lea.sflag (!%p151_p6), [#allocation5], %s156_s21  ;;  %s1106_s26 = scalar_lea.vmem (!%p151_p6), [#allocation4], %s686_s22 }
  0x27   : > { %973 = dma.done.wait (%p1080_p7), %s157_s25, 1024  }
  0x28   : > { %975 = vsyncadd (%p1080_p7), %s157_s25, 4294966272  ;;  %p179_p8 = scmp.lt.s32.totalorder %s998_s15, 2  ;;  %p807_p9 = scmp.eq.s32.totalorder %s998_s15, 0 }
  0x29   : > { %s1011_s28 = smov [#allocation2]  }
  0x2a   : > { %s1115_s27 = scalar_select %p179_p8, %s998_s15, 2 }
  0x2b   : > { %s198_s29 = sshll.u32 %s1011_s28, 4  ;;  %s199_s29 = int_to_ptr.vmem [resolvable:$true] %s198_s29 }
  0x2c   : > { %s181_s5 = scalar_lea.vmem %s1346_s2, %s1115_s27  ;;  %s910_s6 = scalar_lea.vmem %s199_s29, 4096 }
  0x2d   : > { %p911_p10 = scmp.ne.s32.totalorder %s199_s29, %s910_s6  ;;  %p917_p12 = scmp.lt.s32.totalorder %s199_s29, %s199_s29 }
  0x2e   : > { %p918_p13 = scmp.lt.s32.totalorder %s910_s6, %s910_s6 }
  0x2f   : > { %p912_p7 = pnand %p911_p10, %p807_p9 }
  0x30   : > { %p919_p0 = por %p918_p13, %p917_p12 }
  0x31   : > { %p913_p11 = pneg %p912_p7 }
  0x33   : > { %p920_p1 = pnand %p919_p0, %p913_p11 }
  0x35   : > { %923 = shalt.err (!%p920_p1)  }
  0x36   : > { %796 = dma.hbm_to_vmem [thread:$0]  (%p807_p9), %s1344_s0, 4096, %s199_s29, [#allocation3] }
  0x37   : > { %977 = dma.done.wait (%p807_p9), [#allocation3], 4096 }
  0x38   : > { %979 = vsyncadd (%p807_p9), [#allocation3], 4294963200  ;;  %v864_v0 = vld [vmem:[%s1106_s26 + $0x38] sm:$0xff]   ;;  %v865_v1 = vld [vmem:[%s1106_s26 + $0x30] sm:$0xff]   ;;  %p697_p2 = scmp.eq.s32.totalorder %s998_s15, 2 }
  0x39   : > { %729 = vmatprep.subr.bf16.mxu0 %v864_v0  ;;  %777 = vmatprep.subr.bf16.mxu1 %v864_v0  ;;  %v866_v2 = vld [vmem:[%s1106_s26 + $0x28] sm:$0xff]   ;;  %v867_v3 = vld [vmem:[%s1106_s26 + $0x20] sm:$0xff]   ;;  %v868_v10 = vld [vmem:[%s1106_s26 + $0x18] sm:$0xff]  }
  0x3a   : > { %730 = vmatpush3.bf16.msra.mxu0 %v864_v0  ;;  %785 = vmatpush3.bf16.msra.mxu1 %v864_v0  ;;  %v205_v4 = vld [vmem:[#allocation2] sm:$0xff]  ;;  %v206_v5 = vld [vmem:[#allocation2 + $0x8] sm:$0xff]  ;;  %v869_v11 = vld [vmem:[%s1106_s26 + $0x10] sm:$0xff]  }
  0x3b   : > { %731 = vmatprep.subr.bf16.mxu0 %v865_v1  ;;  %778 = vmatprep.subr.bf16.mxu1 %v865_v1  ;;  %v221_v6 = vld [vmem:[#allocation2 + $0x80] sm:$0xff]  ;;  %v237_v7 = vpack.c.bf16 %v206_v5, %v205_v4  ;;  %v222_v8 = vld [vmem:[#allocation2 + $0x88] sm:$0xff]  ;;  %v207_v14 = vld [vmem:[#allocation2 + $0x10] sm:$0xff] }
  0x3c   : > { %v245_v9 = vpack.c.bf16 %v222_v8, %v221_v6  ;;  %v870_v12 = vld [vmem:[%s1106_s26 + $0x8] sm:$0xff]   ;;  %v871_v13 = vld [vmem:[%s1106_s26] sm:$0xff]   ;;  %v208_v15 = vld [vmem:[#allocation2 + $0x18] sm:$0xff] }
  0x3d   : > { %745 = vmatprep.mubr.bf16.mxu0 %v237_v7  ;;  %v223_v16 = vld [vmem:[#allocation2 + $0x90] sm:$0xff]  ;;  %v224_v17 = vld [vmem:[#allocation2 + $0x98] sm:$0xff]  ;;  %v209_v18 = vld [vmem:[#allocation2 + $0x20] sm:$0xff]  ;;  %v238_v22 = vpack.c.bf16 %v208_v15, %v207_v14 }
  0x3e   : > { %732 = vmatpush3.bf16.msra.mxu0 %v865_v1  ;;  %786 = vmatpush3.bf16.msra.mxu1 %v865_v1  ;;  %v210_v19 = vld [vmem:[#allocation2 + $0x28] sm:$0xff]  ;;  %v225_v20 = vld [vmem:[#allocation2 + $0xa0] sm:$0xff]  ;;  %v246_v23 = vpack.c.bf16 %v224_v17, %v223_v16  ;;  %v211_v26 = vld [vmem:[#allocation2 + $0x30] sm:$0xff] }
  0x3f   : > { %733 = vmatprep.subr.bf16.mxu0 %v866_v2  ;;  %779 = vmatprep.subr.bf16.mxu1 %v866_v2  ;;  %v226_v21 = vld [vmem:[#allocation2 + $0xa8] sm:$0xff]  ;;  %v239_v24 = vpack.c.bf16 %v210_v19, %v209_v18  ;;  %v212_v27 = vld [vmem:[#allocation2 + $0x38] sm:$0xff]  ;;  %v227_v28 = vld [vmem:[#allocation2 + $0xb0] sm:$0xff] }
  0x40   : > { %761 = vmatprep.mubr.bf16.mxu1 %v245_v9  ;;  %v247_v25 = vpack.c.bf16 %v226_v21, %v225_v20  ;;  %v228_v29 = vld [vmem:[#allocation2 + $0xb8] sm:$0xff]  ;;  %v213_v30 = vld [vmem:[#allocation2 + $0x40] sm:$0xff]  ;;  %v214_v31 = vld [vmem:[#allocation2 + $0x48] sm:$0xff]  ;;  %v240_v34 = vpack.c.bf16 %v212_v27, %v211_v26 }
  0x41   : > { %v229_v32 = vld [vmem:[#allocation2 + $0xc0] sm:$0xff]  ;;  %v230_v33 = vld [vmem:[#allocation2 + $0xc8] sm:$0xff]  ;;  %v248_v35 = vpack.c.bf16 %v228_v29, %v227_v28  ;;  %v241_v36 = vpack.c.bf16 %v214_v31, %v213_v30  ;;  %v215_v38 = vld [vmem:[#allocation2 + $0x50] sm:$0xff] }
  0x42   : > { %734 = vmatpush3.bf16.msra.mxu0 %v866_v2  ;;  %787 = vmatpush3.bf16.msra.mxu1 %v866_v2  ;;  %v249_v37 = vpack.c.bf16 %v230_v33, %v229_v32  ;;  %v216_v39 = vld [vmem:[#allocation2 + $0x58] sm:$0xff]  ;;  %v231_v40 = vld [vmem:[#allocation2 + $0xd0] sm:$0xff]  ;;  %v217_v42 = vld [vmem:[#allocation2 + $0x60] sm:$0xff] }
  0x43   : > { %735 = vmatprep.subr.bf16.mxu0 %v867_v3  ;;  %780 = vmatprep.subr.bf16.mxu1 %v867_v3  ;;  %v232_v41 = vld [vmem:[#allocation2 + $0xd8] sm:$0xff]  ;;  %v218_v43 = vld [vmem:[#allocation2 + $0x68] sm:$0xff]  ;;  %v233_v44 = vld [vmem:[#allocation2 + $0xe0] sm:$0xff]  ;;  %v242_v46 = vpack.c.bf16 %v216_v39, %v215_v38 }
  0x44   : > { %v234_v45 = vld [vmem:[#allocation2 + $0xe8] sm:$0xff]  ;;  %v250_v47 = vpack.c.bf16 %v232_v41, %v231_v40  ;;  %v243_v48 = vpack.c.bf16 %v218_v43, %v217_v42  ;;  %v219_v50 = vld [vmem:[#allocation2 + $0x70] sm:$0xff]  ;;  %v220_v51 = vld [vmem:[#allocation2 + $0x78] sm:$0xff] }
  0x45   : > { %v251_v49 = vpack.c.bf16 %v234_v45, %v233_v44  ;;  %v235_v52 = vld [vmem:[#allocation2 + $0xf0] sm:$0xff]  ;;  %v236_v53 = vld [vmem:[#allocation2 + $0xf8] sm:$0xff]  ;;  %v244_v54 = vpack.c.bf16 %v220_v51, %v219_v50  ;;  %v1145_v56 = vld [vmem:[%s181_s5] ss:$0 sm:$0xff] }
  0x46   : > { %736 = vmatpush3.bf16.msra.mxu0 %v867_v3  ;;  %788 = vmatpush3.bf16.msra.mxu1 %v867_v3  ;;  %v252_v55 = vpack.c.bf16 %v236_v53, %v235_v52 }
  0x47   : > { %737 = vmatprep.subr.bf16.mxu0 %v868_v10  ;;  %781 = vmatprep.subr.bf16.mxu1 %v868_v10 }
  0x4a   : > { %738 = vmatpush3.bf16.msra.mxu0 %v868_v10  ;;  %789 = vmatpush3.bf16.msra.mxu1 %v868_v10 }
  0x4b   : > { %739 = vmatprep.subr.bf16.mxu0 %v869_v11  ;;  %782 = vmatprep.subr.bf16.mxu1 %v869_v11 }
  0x4e   : > { %740 = vmatpush3.bf16.msra.mxu0 %v869_v11  ;;  %790 = vmatpush3.bf16.msra.mxu1 %v869_v11 }
  0x4f   : > { %741 = vmatprep.subr.bf16.mxu0 %v870_v12  ;;  %783 = vmatprep.subr.bf16.mxu1 %v870_v12 }
  0x52   : > { %742 = vmatpush3.bf16.msra.mxu0 %v870_v12  ;;  %791 = vmatpush3.bf16.msra.mxu1 %v870_v12 }
  0x53   : > { %743 = vmatprep.subr.bf16.mxu0 %v871_v13  ;;  %784 = vmatprep.subr.bf16.mxu1 %v871_v13 }
  0x56   : > { %744 = vmatpush3.bf16.msra.mxu0 %v871_v13  ;;  %792 = vmatpush3.bf16.msra.mxu1 %v871_v13 }
  0x59   : > { %746 = vmatmul.mubr.bf16.vlgmr.msra.gmra.mxu0 %v238_v22  ;;  %762 = vmatmul.mubr.bf16.vlgmr.msra.gmra.mxu1 %v246_v23 }
  0x5a   : > { %749 = vmatprep.mubr.bf16.mxu0 %v239_v24  ;;  %765 = vmatprep.mubr.bf16.mxu1 %v247_v25 }
  0x61   : > { %750 = vmatmul.mubr.bf16.gmra.mxu0 %v240_v34  ;;  %766 = vmatmul.mubr.bf16.gmra.mxu1 %v248_v35 }
  0x62   : > { %753 = vmatprep.mubr.bf16.mxu0 %v241_v36  ;;  %769 = vmatprep.mubr.bf16.mxu1 %v249_v37 }
  0x69   : > { %754 = vmatmul.mubr.bf16.gmra.mxu0 %v242_v46  ;;  %770 = vmatmul.mubr.bf16.gmra.mxu1 %v250_v47 }
  0x6a   : > { %757 = vmatprep.mubr.bf16.mxu0 %v243_v48  ;;  %773 = vmatprep.mubr.bf16.mxu1 %v251_v49 }
  0x71   : > { %758 = vmatmul.mubr.bf16.gmra.mxu0 %v244_v54  ;;  %774 = vmatmul.mubr.bf16.gmra.mxu1 %v252_v55 }
 0x119   : > { %v747_v57 = vpop.f32.mrf.mxu0  ;;  %v763_v58 = vpop.f32.mrf.mxu1 }
 0x11a   : > { %v1148_v59 = vadd.f32 %v747_v57, %v1145_v56  ;;  %v1151_v60 = vadd.f32 %v763_v58, %v1145_v56 }
 0x11b   : > { %v358_v61 = vpop.f32.mrf.mxu0  ;;  %v422_v62 = vpop.f32.mrf.mxu1 }
 0x11c   : > { %v1154_v63 = vadd.f32 %v1145_v56, %v358_v61  ;;  %v1157_v0 = vadd.f32 %v1145_v56, %v422_v62 }
 0x11d   : > { %v748_v1 = vpop.f32.mrf.mxu0  ;;  %v764_v2 = vpop.f32.mrf.mxu1 }
 0x11e   : > { %v1160_v3 = vadd.f32 %v748_v1, %v1145_v56  ;;  %v1163_v4 = vadd.f32 %v764_v2, %v1145_v56 }
 0x11f   : > { %v361_v5 = vpop.f32.mrf.mxu0  ;;  %v425_v6 = vpop.f32.mrf.mxu1 }
 0x120   : > { %v1166_v7 = vadd.f32 %v1145_v56, %v361_v5  ;;  %v1169_v8 = vadd.f32 %v1145_v56, %v425_v6 }
 0x121   : > { %v751_v9 = vpop.f32.mrf.mxu0  ;;  %v767_v10 = vpop.f32.mrf.mxu1 }
 0x122   : > { %v1172_v11 = vadd.f32 %v751_v9, %v1145_v56  ;;  %v1175_v12 = vadd.f32 %v767_v10, %v1145_v56 }
 0x123   : > { %v374_v13 = vpop.f32.mrf.mxu0  ;;  %v438_v14 = vpop.f32.mrf.mxu1 }
 0x124   : > { %v1178_v15 = vadd.f32 %v1145_v56, %v374_v13  ;;  %v1181_v16 = vadd.f32 %v1145_v56, %v438_v14 }
 0x125   : > { %v752_v17 = vpop.f32.mrf.mxu0  ;;  %v768_v18 = vpop.f32.mrf.mxu1 }
 0x126   : > { %v1184_v19 = vadd.f32 %v752_v17, %v1145_v56  ;;  %v1187_v20 = vadd.f32 %v768_v18, %v1145_v56 }
 0x127   : > { %v377_v21 = vpop.f32.mrf.mxu0  ;;  %v441_v22 = vpop.f32.mrf.mxu1 }
 0x128   : > { %v1190_v23 = vadd.f32 %v1145_v56, %v377_v21  ;;  %v1193_v24 = vadd.f32 %v1145_v56, %v441_v22 }
 0x129   : > { %v755_v25 = vpop.f32.mrf.mxu0  ;;  %v771_v26 = vpop.f32.mrf.mxu1 }
 0x12a   : > { %v1196_v27 = vadd.f32 %v755_v25, %v1145_v56  ;;  %v1199_v28 = vadd.f32 %v771_v26, %v1145_v56 }
 0x12b   : > { %v390_v29 = vpop.f32.mrf.mxu0  ;;  %v454_v30 = vpop.f32.mrf.mxu1 }
 0x12c   : > { %v1202_v31 = vadd.f32 %v1145_v56, %v390_v29  ;;  %v1205_v32 = vadd.f32 %v1145_v56, %v454_v30 }
 0x12d   : > { %v756_v33 = vpop.f32.mrf.mxu0  ;;  %v772_v34 = vpop.f32.mrf.mxu1 }
 0x12e   : > { %v1208_v35 = vadd.f32 %v756_v33, %v1145_v56  ;;  %v1211_v36 = vadd.f32 %v772_v34, %v1145_v56 }
 0x12f   : > { %v393_v37 = vpop.f32.mrf.mxu0  ;;  %v457_v38 = vpop.f32.mrf.mxu1 }
 0x130   : > { %v1214_v39 = vadd.f32 %v1145_v56, %v393_v37  ;;  %v1217_v40 = vadd.f32 %v1145_v56, %v457_v38 }
 0x131   : > { %v759_v41 = vpop.f32.mrf.mxu0  ;;  %v775_v42 = vpop.f32.mrf.mxu1 }
 0x132   : > { %v1220_v43 = vadd.f32 %v759_v41, %v1145_v56  ;;  %v1223_v44 = vadd.f32 %v775_v42, %v1145_v56 }
 0x133   : > { %v406_v45 = vpop.f32.mrf.mxu0  ;;  %v470_v46 = vpop.f32.mrf.mxu1 }
 0x134   : > { %v1226_v47 = vadd.f32 %v1145_v56, %v406_v45  ;;  %v1229_v48 = vadd.f32 %v1145_v56, %v470_v46  ;;  %488 = sbr.rel (%p697_p2) target bundleno = 331 (0x14b), region = 44 }
 0x135   : > { %v760_v49 = vpop.f32.mrf.mxu0  ;;  %v776_v50 = vpop.f32.mrf.mxu1 }
 0x136   : > { %v1232_v51 = vadd.f32 %v760_v49, %v1145_v56  ;;  %v1235_v52 = vadd.f32 %v776_v50, %v1145_v56 }
 0x137   : > { %v409_v53 = vpop.f32.mrf.mxu0  ;;  %v473_v54 = vpop.f32.mrf.mxu1 }
 0x138   : > { %v1238_v55 = vadd.f32 %v1145_v56, %v409_v53  ;;  %v1241_v57 = vadd.f32 %v1145_v56, %v473_v54 }
 0x139   : > { %v489_v58 = vmax.f32 %v1154_v63, 0.0  ;;  %v490_v61 = vmax.f32 %v1166_v7, 0.0  ;;  %v491_v62 = vmax.f32 %v1148_v59, 0.0  ;;  %v492_v1 = vmax.f32 %v1160_v3, 0.0 }
 0x13a   : > { %v493_v2 = vmax.f32 %v1178_v15, 0.0  ;;  %v494_v5 = vmax.f32 %v1190_v23, 0.0  ;;  %v495_v6 = vmax.f32 %v1172_v11, 0.0  ;;  %v496_v56 = vmax.f32 %v1184_v19, 0.0 }
 0x13b   : > { %521 = vst [vmem:[#allocation2] sm:$0xff] %v489_v58  ;;  %522 = vst [vmem:[#allocation2 + $0x8] sm:$0xff] %v490_v61  ;;  %v497_v9 = vmax.f32 %v1202_v31, 0.0  ;;  %v498_v10 = vmax.f32 %v1214_v39, 0.0  ;;  %v499_v13 = vmax.f32 %v1196_v27, 0.0  ;;  %v500_v14 = vmax.f32 %v1208_v35, 0.0 }
 0x13c   : > { %523 = vst [vmem:[#allocation2 + $0x10] sm:$0xff] %v491_v62  ;;  %524 = vst [vmem:[#allocation2 + $0x18] sm:$0xff] %v492_v1  ;;  %v501_v17 = vmax.f32 %v1226_v47, 0.0  ;;  %v502_v18 = vmax.f32 %v1238_v55, 0.0  ;;  %v503_v21 = vmax.f32 %v1220_v43, 0.0  ;;  %v504_v22 = vmax.f32 %v1232_v51, 0.0 }
 0x13d   : > { %525 = vst [vmem:[#allocation2 + $0x20] sm:$0xff] %v493_v2  ;;  %526 = vst [vmem:[#allocation2 + $0x28] sm:$0xff] %v494_v5  ;;  %v505_v25 = vmax.f32 %v1157_v0, 0.0  ;;  %v506_v26 = vmax.f32 %v1169_v8, 0.0  ;;  %v507_v29 = vmax.f32 %v1151_v60, 0.0  ;;  %v508_v30 = vmax.f32 %v1163_v4, 0.0 }
 0x13e   : > { %527 = vst [vmem:[#allocation2 + $0x30] sm:$0xff] %v495_v6  ;;  %528 = vst [vmem:[#allocation2 + $0x38] sm:$0xff] %v496_v56  ;;  %v509_v33 = vmax.f32 %v1181_v16, 0.0  ;;  %v510_v34 = vmax.f32 %v1193_v24, 0.0  ;;  %v511_v37 = vmax.f32 %v1175_v12, 0.0  ;;  %v512_v38 = vmax.f32 %v1187_v20, 0.0 }
 0x13f   : > { %529 = vst [vmem:[#allocation2 + $0x40] sm:$0xff] %v497_v9  ;;  %530 = vst [vmem:[#allocation2 + $0x48] sm:$0xff] %v498_v10  ;;  %v513_v41 = vmax.f32 %v1205_v32, 0.0  ;;  %v514_v42 = vmax.f32 %v1217_v40, 0.0  ;;  %v515_v45 = vmax.f32 %v1199_v28, 0.0  ;;  %v516_v46 = vmax.f32 %v1211_v36, 0.0 }
 0x140   : > { %531 = vst [vmem:[#allocation2 + $0x50] sm:$0xff] %v499_v13  ;;  %532 = vst [vmem:[#allocation2 + $0x58] sm:$0xff] %v500_v14  ;;  %v517_v49 = vmax.f32 %v1229_v48, 0.0  ;;  %v518_v50 = vmax.f32 %v1241_v57, 0.0  ;;  %v519_v53 = vmax.f32 %v1223_v44, 0.0  ;;  %v520_v54 = vmax.f32 %v1235_v52, 0.0 }
 0x141   : > { %533 = vst [vmem:[#allocation2 + $0x60] sm:$0xff] %v501_v17  ;;  %534 = vst [vmem:[#allocation2 + $0x68] sm:$0xff] %v502_v18 }
 0x142   : > { %535 = vst [vmem:[#allocation2 + $0x70] sm:$0xff] %v503_v21  ;;  %536 = vst [vmem:[#allocation2 + $0x78] sm:$0xff] %v504_v22 }
 0x143   : > { %537 = vst [vmem:[#allocation2 + $0x80] sm:$0xff] %v505_v25  ;;  %538 = vst [vmem:[#allocation2 + $0x88] sm:$0xff] %v506_v26 }
 0x144   : > { %539 = vst [vmem:[#allocation2 + $0x90] sm:$0xff] %v507_v29  ;;  %540 = vst [vmem:[#allocation2 + $0x98] sm:$0xff] %v508_v30 }
 0x145   : > { %541 = vst [vmem:[#allocation2 + $0xa0] sm:$0xff] %v509_v33  ;;  %542 = vst [vmem:[#allocation2 + $0xa8] sm:$0xff] %v510_v34 }
 0x146   : > { %543 = vst [vmem:[#allocation2 + $0xb0] sm:$0xff] %v511_v37  ;;  %544 = vst [vmem:[#allocation2 + $0xb8] sm:$0xff] %v512_v38 }
 0x147   : > { %545 = vst [vmem:[#allocation2 + $0xc0] sm:$0xff] %v513_v41  ;;  %546 = vst [vmem:[#allocation2 + $0xc8] sm:$0xff] %v514_v42 }
 0x148   : > { %547 = vst [vmem:[#allocation2 + $0xd0] sm:$0xff] %v515_v45  ;;  %548 = vst [vmem:[#allocation2 + $0xd8] sm:$0xff] %v516_v46 }
 0x149   : > { %549 = vst [vmem:[#allocation2 + $0xe0] sm:$0xff] %v517_v49  ;;  %550 = vst [vmem:[#allocation2 + $0xe8] sm:$0xff] %v518_v50 }
 0x14a   : > { %551 = vst [vmem:[#allocation2 + $0xf0] sm:$0xff] %v519_v53  ;;  %552 = vst [vmem:[#allocation2 + $0xf8] sm:$0xff] %v520_v54 }
 0x14b PF: > { %p698_p3 = scmp.ne.s32.totalorder %s998_s15, 2 }
 0x14d   : > { %556 = sbr.rel (%p698_p3) target bundleno = 354 (0x162), region = 48 }
 0x152   : > { %557 = vst [vmem:[#allocation7] sm:$0xff] %v1154_v63  ;;  %558 = vst [vmem:[#allocation7 + $0x8] sm:$0xff] %v1166_v7 }
 0x153   : > { %559 = vst [vmem:[#allocation7 + $0x10] sm:$0xff] %v1148_v59  ;;  %560 = vst [vmem:[#allocation7 + $0x18] sm:$0xff] %v1160_v3 }
 0x154   : > { %561 = vst [vmem:[#allocation7 + $0x20] sm:$0xff] %v1178_v15  ;;  %562 = vst [vmem:[#allocation7 + $0x28] sm:$0xff] %v1190_v23 }
 0x155   : > { %563 = vst [vmem:[#allocation7 + $0x30] sm:$0xff] %v1172_v11  ;;  %564 = vst [vmem:[#allocation7 + $0x38] sm:$0xff] %v1184_v19 }
 0x156   : > { %565 = vst [vmem:[#allocation7 + $0x40] sm:$0xff] %v1202_v31  ;;  %566 = vst [vmem:[#allocation7 + $0x48] sm:$0xff] %v1214_v39 }
 0x157   : > { %567 = vst [vmem:[#allocation7 + $0x50] sm:$0xff] %v1196_v27  ;;  %568 = vst [vmem:[#allocation7 + $0x58] sm:$0xff] %v1208_v35 }
 0x158   : > { %569 = vst [vmem:[#allocation7 + $0x60] sm:$0xff] %v1226_v47  ;;  %570 = vst [vmem:[#allocation7 + $0x68] sm:$0xff] %v1238_v55 }
 0x159   : > { %571 = vst [vmem:[#allocation7 + $0x70] sm:$0xff] %v1220_v43  ;;  %572 = vst [vmem:[#allocation7 + $0x78] sm:$0xff] %v1232_v51 }
 0x15a   : > { %573 = vst [vmem:[#allocation7 + $0x80] sm:$0xff] %v1157_v0  ;;  %574 = vst [vmem:[#allocation7 + $0x88] sm:$0xff] %v1169_v8 }
 0x15b   : > { %575 = vst [vmem:[#allocation7 + $0x90] sm:$0xff] %v1151_v60  ;;  %576 = vst [vmem:[#allocation7 + $0x98] sm:$0xff] %v1163_v4 }
 0x15c   : > { %577 = vst [vmem:[#allocation7 + $0xa0] sm:$0xff] %v1181_v16  ;;  %578 = vst [vmem:[#allocation7 + $0xa8] sm:$0xff] %v1193_v24 }
 0x15d   : > { %579 = vst [vmem:[#allocation7 + $0xb0] sm:$0xff] %v1175_v12  ;;  %580 = vst [vmem:[#allocation7 + $0xb8] sm:$0xff] %v1187_v20 }
 0x15e   : > { %581 = vst [vmem:[#allocation7 + $0xc0] sm:$0xff] %v1205_v32  ;;  %582 = vst [vmem:[#allocation7 + $0xc8] sm:$0xff] %v1217_v40 }
 0x15f   : > { %583 = vst [vmem:[#allocation7 + $0xd0] sm:$0xff] %v1199_v28  ;;  %584 = vst [vmem:[#allocation7 + $0xd8] sm:$0xff] %v1211_v36 }
 0x160   : > { %585 = vst [vmem:[#allocation7 + $0xe0] sm:$0xff] %v1229_v48  ;;  %586 = vst [vmem:[#allocation7 + $0xe8] sm:$0xff] %v1241_v57 }
 0x161   : > { %587 = vst [vmem:[#allocation7 + $0xf0] sm:$0xff] %v1223_v44  ;;  %588 = vst [vmem:[#allocation7 + $0xf8] sm:$0xff] %v1235_v52 }
 0x162 PF: > { %p1311_p4 = scmp.eq.s32.totalorder %s679_s18, 2  ;;  %s1012_s10 = smov [#allocation7]  }
 0x163   : > { %s598_s11 = sshll.u32 %s1012_s10, 4  ;;  %s599_s11 = int_to_ptr.vmem [resolvable:$true] %s598_s11 }
 0x164   : > { %s924_s12 = scalar_lea.vmem %s599_s11, 4096  ;;  %p931_p9 = scmp.lt.s32.totalorder %s599_s11, %s599_s11 }
 0x165   : > { %p925_p5 = scmp.ne.s32.totalorder %s599_s11, %s924_s12  ;;  %p932_p10 = scmp.lt.s32.totalorder %s924_s12, %s924_s12 }
 0x167   : > { %p926_p6 = pnand %p925_p5, %p1311_p4  ;;  %p933_p7 = por %p932_p10, %p931_p9 }
 0x169   : > { %p927_p8 = pneg %p926_p6 }
 0x16b   : > { %p934_p11 = pnand %p933_p7, %p927_p8 }
 0x16d   : > { %937 = shalt.err (!%p934_p11)
}
 0x16e   : > { %s1013_s20 = smov 128   ;;  %s1014_s18 = smov 8  }
 0x16f   : > { %799 = dma.vmem_to_hbm [thread:$0]  (%p1311_p4), %s599_s11, 4096, %s1347_s3, [#allocation6], %s1013_s20, %s1013_s20, %s1014_s18  }
 0x170   : > { %981 = dma.done.wait (%p1311_p4), [#allocation6], 4096  }
 0x171   : > { %983 = vsyncadd (%p1311_p4), [#allocation6], 4294963200 }
 0x172 PF: > { %s17_s17 = sadd.s32 1, %s1006_s17   ;;  %s1352_s12 = smov %s990_s13 }
 0x173   : > { %p14_p12 = scmp.ge.s32.totalorder %s17_s17, 5   ;;  %s1353_s13 = smov %s994_s14 }
 0x174   : > { %s1354_s14 = smov %s1086_s24  ;;  %s1355_s15 = smov %s1002_s16 }
 0x175   : > { %s1356_s16 = smov %s1358_s19  ;;  %16 = sbr.rel (!%p14_p12) target bundleno = 5 (0x5), region = 86 }
 0x17a   :  { %614 = vsyncpa [#allocation5], 1 }
 0x17b   :  { %616 = vsyncpa [#allocation5 + $0x1], 1 }
 0x17c   :  { %617 = vsyncpa [#allocation6], 1 }
 0x17d   :  { %619 = vsyncpa [#allocation6 + $0x1], 1 }
 0x17e   :  { %620 = vsyncmov [#allocation3] }
 0x181   :  { %s621_s25 = vpop.sfrf %620 }
 0x182   :  { %p703_p13 = scmp.ne.s32.totalorder %s621_s25, 0 }
 0x184   :  { %625 = shalt.err (%p703_p13)  }

</bundles_post_ra>
